<compile_context>
chip_gen: v7x
topology: tpu7x:2x2x1
jax: 0.10.0
libtpu: 0.0.40
codegen_flags: <defaults>
</compile_context>

<pallas_src>
import functools

import jax
import jax.numpy as jnp
from jax import lax
from jax.experimental import pallas as pl
from jax.experimental.pallas import tpu as pltpu


def _triplet_loss_kernel(
    left_ref,    # (T_i, D)  normalized left rows (MXU dtype)
    right_ref,   # (D, T_j)  normalized right cols, pre-transposed (MXU dtype)
    diag_ref,    # (T_i, 1)  f32, (diag - margin) for this row block
    out_ref,     # (T_i, 1)  f32 per-row result, written once at the last j
    acc_scr,     # VMEM (T_i, 1) f32 running sum / running max over j
    *,
    t_i,
    t_j,
    max_violation,
):
    i = pl.program_id(0)
    j = pl.program_id(1)

    @pl.when(j == 0)
    def _init():
        acc_scr[...] = jnp.zeros_like(acc_scr)

    # scores = l_i @ r_j : (T_i, T_j) f32, no in-kernel operand transpose.
    scores = jnp.dot(left_ref[...], right_ref[...],
                     preferred_element_type=jnp.float32)

    # hinge: max(margin + scores - diag, 0); margin is folded into diag_ref.
    cost = jnp.maximum(scores - diag_ref[...], 0.0)

    if max_violation:
        # Hardest negative per row: diagonal must be masked to 0.  Only tiles
        # intersecting the global diagonal need the iota/compare/select.
        row0 = i * t_i
        col0 = j * t_j
        intersects = jnp.logical_and(row0 < col0 + t_j, col0 < row0 + t_i)

        @pl.when(intersects)
        def _diag_tile():
            rows = lax.broadcasted_iota(jnp.int32, cost.shape, 0) + row0
            cols = lax.broadcasted_iota(jnp.int32, cost.shape, 1) + col0
            c = jnp.where(rows == cols, 0.0, cost)
            acc_scr[...] = jnp.maximum(acc_scr[...],
                                       jnp.max(c, axis=1, keepdims=True))

        @pl.when(jnp.logical_not(intersects))
        def _plain_tile():
            acc_scr[...] = jnp.maximum(acc_scr[...],
                                       jnp.max(cost, axis=1, keepdims=True))
    else:
        # Sum mode: the diagonal is NOT masked here; each diagonal hinge is
        # exactly max(margin, 0), which the wrapper subtracts once at the end.
        acc_scr[...] = acc_scr[...] + jnp.sum(cost, axis=1, keepdims=True)

    @pl.when(j == pl.num_programs(1) - 1)
    def _finalize():
        out_ref[...] = acc_scr[...]


def _pick_tiles(n, d):
    """Choose (T_i, T_j) row/column tiles."""
    # Column tile (`right`): keep all of `right` resident for small/medium N
    # (single j block -> one HBM pass); otherwise MXU-native 256, else 128.
    if n <= 1024:
        t_j = n
    elif n % 256 == 0:
        t_j = 256
    elif n % 128 == 0:
        t_j = 128
    else:
        t_j = n

    # Row tile (`left`): as large as possible while (a) dividing N,
    # (b) keeping the (T_i, T_j) f32 scores/cost temporaries modest, and
    # (c) keeping >= 2 row blocks so v7x's two TensorCores both get work.
    max_tile_elems = 2 * 1024 * 1024   # ~8 MiB per (T_i, T_j) f32 temporary
    t_i = None
    for t in (2048, 1024, 512, 256, 128, 64, 32, 16, 8):
        if t > n or n % t != 0 or t * t_j > max_tile_elems:
            continue
        if t_i is None:
            t_i = t
        if n // t >= 2:
            t_i = t
            break
    if t_i is None:
        t_i = n
    return t_i, t_j


def _vmem_budget_bytes():
    cap = 64 << 20   # conservative default = v7x physical VMEM per TensorCore
    try:
        info_cap = pltpu.get_tpu_info().vmem_capacity_bytes
        if info_cap:
            cap = int(info_cap)
    except Exception:
        pass
    return int(0.75 * cap)


def triplet_loss(
    left,
    right,
    *,
    margin=0.0,
    max_violation=False,
    tile_i=None,
    tile_j=None,
    mxu_dtype=jnp.bfloat16,
):
    """Pallas TPU implementation of TripletLoss.forward (cosine measure)."""
    assert left.ndim == 2 and right.ndim == 2
    assert left.shape == right.shape
    n, d = left.shape

    t_i_auto, t_j_auto = _pick_tiles(n, d)
    t_i = int(tile_i) if tile_i is not None else t_i_auto
    t_j = int(tile_j) if tile_j is not None else t_j_auto
    assert n % t_i == 0 and n % t_j == 0, (n, t_i, t_j)
    grid = (n // t_i, n // t_j)

    # One fused XLA pass over the inputs (negligible vs. kernel traffic):
    # L2-normalize, compute the (diag - margin) vector in f32, cast the
    # streamed MXU operands to `mxu_dtype`, and pre-transpose `right` so the
    # kernel does a plain (T_i, D) @ (D, T_j) matmul.
    lf = left.astype(jnp.float32)
    rf = right.astype(jnp.float32)
    l = lf * lax.rsqrt(jnp.sum(lf * lf, axis=1, keepdims=True))
    r = rf * lax.rsqrt(jnp.sum(rf * rf, axis=1, keepdims=True))
    diag_m = jnp.sum(l * r, axis=1, keepdims=True) - float(margin)   # (N,1) f32
    l_mxu = l.astype(mxu_dtype)                                      # (N, D)
    r_mxu_t = r.T.astype(mxu_dtype)                                  # (D, N)

    kernel = functools.partial(
        _triplet_loss_kernel, t_i=t_i, t_j=t_j,
        max_violation=bool(max_violation))

    mxu_itemsize = jnp.dtype(mxu_dtype).itemsize
    working_set = (
        2 * t_i * d * mxu_itemsize       # left block, double-buffered
        + 2 * d * t_j * mxu_itemsize     # right block, double-buffered
        + 4 * t_i * 4                    # diag + out blocks, double-buffered
        + t_i * 4                        # acc scratch
        + 3 * t_i * t_j * 4              # scores / cost / reduce temporaries
    )
    vmem_limit = int(min(max(int(1.5 * working_set), 8 << 20),
                         _vmem_budget_bytes()))

    right_passes = 1 if grid[1] == 1 else grid[0]
    cost_estimate = pl.CostEstimate(
        flops=2 * n * n * d + 4 * n * n,
        transcendentals=0,
        bytes_accessed=int(n * d * mxu_itemsize * (1 + right_passes) + 8 * n),
    )

    per_row = pl.pallas_call(
        kernel,
        out_shape=jax.ShapeDtypeStruct((n, 1), jnp.float32),
        grid_spec=pltpu.PrefetchScalarGridSpec(
            num_scalar_prefetch=0,
            grid=grid,
            in_specs=[
                pl.BlockSpec((t_i, d), lambda i, j: (i, 0)),   # left rows i
                pl.BlockSpec((d, t_j), lambda i, j: (0, j)),   # right cols j
                pl.BlockSpec((t_i, 1), lambda i, j: (i, 0)),   # diag - margin
            ],
            out_specs=pl.BlockSpec((t_i, 1), lambda i, j: (i, 0)),
            scratch_shapes=[pltpu.VMEM((t_i, 1), jnp.float32)],
        ),
        compiler_params=pltpu.CompilerParams(
            dimension_semantics=("parallel", "arbitrary"),
            vmem_limit_bytes=vmem_limit,
        ),
        cost_estimate=cost_estimate,
    )(l_mxu, r_mxu_t, diag_m)

    total = jnp.sum(per_row)
    if not max_violation:
        # Unmasked diagonal hinges each contribute exactly max(margin, 0).
        total = total - n * max(float(margin), 0.0)
    return total


def _reference(left, right, margin=0.0, max_violation=False):
    """Pure-JAX reference mirroring the PyTorch module."""
    l = left / jnp.sqrt(jnp.sum(left**2, axis=1, keepdims=True))
    r = right / jnp.sqrt(jnp.sum(right**2, axis=1, keepdims=True))
    scores = l @ r.T
    diag = jnp.diag(scores)[:, None]
    cost_r = jnp.maximum(margin + scores - diag, 0.0)
    eye = jnp.eye(scores.shape[0], dtype=bool)
    cost_r = jnp.where(eye, 0.0, cost_r)
    if max_violation:
        cost_r = jnp.max(cost_r, axis=1)
    return jnp.sum(cost_r)


if __name__ == "__main__":
    key = jax.random.PRNGKey(0)
    k1, k2, k3, k4 = jax.random.split(key, 4)

    # Small shapes: (batch, embed_dim) embedding matrices.
    N, D = 128, 64
    left = jax.random.normal(k1, (N, D), dtype=jnp.float32)
    right = jax.random.normal(k2, (N, D), dtype=jnp.float32)

    # 1) Sum-of-hinge loss, f32 MXU operands (tight tolerance).
    out = triplet_loss(left, right, margin=0.2, max_violation=False,
                       mxu_dtype=jnp.float32)
    out = jax.block_until_ready(out)
    ref = _reference(left, right, margin=0.2, max_violation=False)
    assert jnp.allclose(out, ref, rtol=1e-4, atol=1e-2), (out, ref)

    # 2) Hardest-negative (max_violation=True), f32 MXU operands.
    out_mv = triplet_loss(left, right, margin=0.1, max_violation=True,
                          mxu_dtype=jnp.float32)
    out_mv = jax.block_until_ready(out_mv)
    ref_mv = _reference(left, right, margin=0.1, max_violation=True)
    assert jnp.allclose(out_mv, ref_mv, rtol=1e-4, atol=1e-2), (out_mv, ref_mv)

    # 3) Default bf16 MXU operands (fast path); hinge/diag stay f32.
    out_bf16 = triplet_loss(left, right, margin=0.2, max_violation=False)
    out_bf16 = jax.block_until_ready(out_bf16)
    assert jnp.allclose(out_bf16, ref, rtol=2e-2, atol=2e-1), (out_bf16, ref)

    # 4) Decoupled tiles with a streamed `right` (grid_j > 1) to exercise the
    #    global-index diagonal gating, in both modes.
    N2, D2 = 256, 64
    left2 = jax.random.normal(k3, (N2, D2), dtype=jnp.float32)
    right2 = jax.random.normal(k4, (N2, D2), dtype=jnp.float32)
    out2_mv = triplet_loss(left2, right2, margin=0.15, max_violation=True,
                           tile_i=64, tile_j=128, mxu_dtype=jnp.float32)
    out2_mv = jax.block_until_ready(out2_mv)
    ref2_mv = _reference(left2, right2, margin=0.15, max_violation=True)
    assert jnp.allclose(out2_mv, ref2_mv, rtol=1e-4, atol=1e-2), (out2_mv, ref2_mv)

    out2_sum = triplet_loss(left2, right2, margin=0.15, max_violation=False,
                            tile_i=64, tile_j=128, mxu_dtype=jnp.float32)
    out2_sum = jax.block_until_ready(out2_sum)
    ref2_sum = _reference(left2, right2, margin=0.15, max_violation=False)
    assert jnp.allclose(out2_sum, ref2_sum, rtol=1e-4, atol=1e-2), (out2_sum, ref2_sum)

    print("KERNEL_OK")
</pallas_src>

<mosaic_0001>
module attributes {stable_mosaic.version = 11 : i64} {
  func.func @_triplet_loss_kernel(%arg0: i32, %arg1: i32, %arg2: memref<64x64xf32, #tpu.memory_space<vmem>>, %arg3: memref<64x128xf32, #tpu.memory_space<vmem>>, %arg4: memref<64x1xf32, #tpu.memory_space<vmem>>, %arg5: memref<64x1xf32, #tpu.memory_space<vmem>>, %arg6: memref<64x1xf32, #tpu.memory_space<vmem>>) attributes {dimension_semantics = [#tpu.dimension_semantics<parallel>, #tpu.dimension_semantics<arbitrary>], iteration_bounds = array<i64: 2, 1>, scalar_prefetch = 0 : i64, scratch_operands = 1 : i64, tpu.core_type = #tpu.core_type<tc>, window_params = [{transform_indices = @transform_0, window_bounds = array<i64: 64, 64>}, {transform_indices = @transform_1, window_bounds = array<i64: 64, 128>}, {transform_indices = @transform_2, window_bounds = array<i64: 64, 1>}, {transform_indices = @transform_3, window_bounds = array<i64: 64, 1>}]} {
    %c0_i32 = arith.constant 0 : i32
    %0 = arith.cmpi eq, %arg1, %c0_i32 : i32
    %1 = arith.extui %0 : i1 to i32
    %c0_i32_0 = arith.constant 0 : i32
    %2 = arith.cmpi ne, %1, %c0_i32_0 : i32
    scf.if %2 {
      %cst_14 = arith.constant 0.000000e+00 : f32
      %19 = vector.broadcast %cst_14 : f32 to vector<64x1xf32>
      %c0_15 = arith.constant 0 : index
      %c0_16 = arith.constant 0 : index
      %20 = vector.load %arg6[%c0_15, %c0_16] : memref<64x1xf32, #tpu.memory_space<vmem>>, vector<64x1xf32>
      tpu.vector_store %arg6[%c0_15, %c0_16], %19 {strides = array<i32>} : memref<64x1xf32, #tpu.memory_space<vmem>>, vector<64x1xf32>,
    } else {
    }
    %c0 = arith.constant 0 : index
    %c0_1 = arith.constant 0 : index
    %3 = vector.load %arg2[%c0, %c0_1] : memref<64x64xf32, #tpu.memory_space<vmem>>, vector<64x64xf32>
    %c0_2 = arith.constant 0 : index
    %c0_3 = arith.constant 0 : index
    %4 = vector.load %arg3[%c0_2, %c0_3] : memref<64x128xf32, #tpu.memory_space<vmem>>, vector<64x128xf32>
    %cst = arith.constant dense<0.000000e+00> : vector<64x128xf32>
    %5 = tpu.matmul %3, %4, %cst {dimension_numbers = #tpu.dot_dimension_numbers<[1], [0], [0], [1], [0, 0, 1, 1], [], []>} : vector<64x64xf32>, vector<64x128xf32>, vector<64x128xf32> -> vector<64x128xf32>
    %c0_4 = arith.constant 0 : index
    %c0_5 = arith.constant 0 : index
    %6 = vector.load %arg4[%c0_4, %c0_5] : memref<64x1xf32, #tpu.memory_space<vmem>>, vector<64x1xf32>
    %7 = vector.broadcast %6 : vector<64x1xf32> to vector<64x128xf32>
    %8 = arith.subf %5, %7 : vector<64x128xf32>
    %cst_6 = arith.constant 0.000000e+00 : f32
    %9 = vector.broadcast %cst_6 : f32 to vector<64x128xf32>
    %10 = arith.maximumf %8, %9 : vector<64x128xf32>
    %c0_7 = arith.constant 0 : index
    %c0_8 = arith.constant 0 : index
    %11 = vector.load %arg6[%c0_7, %c0_8] : memref<64x1xf32, #tpu.memory_space<vmem>>, vector<64x1xf32>
    %cst_9 = arith.constant dense<0.000000e+00> : vector<64xf32>
    %12 = vector.multi_reduction <add>, %10, %cst_9 [1] : vector<64x128xf32> to vector<64xf32>
    %13 = vector.shape_cast %12 : vector<64xf32> to vector<64x1xf32>
    %14 = arith.addf %11, %13 : vector<64x1xf32>
    %c0_10 = arith.constant 0 : index
    %c0_11 = arith.constant 0 : index
    %15 = vector.load %arg6[%c0_10, %c0_11] : memref<64x1xf32, #tpu.memory_space<vmem>>, vector<64x1xf32>
    tpu.vector_store %arg6[%c0_10, %c0_11], %14 {strides = array<i32>} : memref<64x1xf32, #tpu.memory_space<vmem>>, vector<64x1xf32>,
    %c0_i32_12 = arith.constant 0 : i32
    %16 = arith.cmpi eq, %arg1, %c0_i32_12 : i32
    %17 = arith.extui %16 : i1 to i32
    %c0_i32_13 = arith.constant 0 : i32
    %18 = arith.cmpi ne, %17, %c0_i32_13 : i32
    scf.if %18 {
      %c0_14 = arith.constant 0 : index
      %c0_15 = arith.constant 0 : index
      %19 = vector.load %arg6[%c0_14, %c0_15] : memref<64x1xf32, #tpu.memory_space<vmem>>, vector<64x1xf32>
      %c0_16 = arith.constant 0 : index
      %c0_17 = arith.constant 0 : index
      %20 = vector.load %arg5[%c0_16, %c0_17] : memref<64x1xf32, #tpu.memory_space<vmem>>, vector<64x1xf32>
      tpu.vector_store %arg5[%c0_16, %c0_17], %19 {strides = array<i32>} : memref<64x1xf32, #tpu.memory_space<vmem>>, vector<64x1xf32>,
    } else {
    }
    return
  }
  func.func @transform_0(%arg0: i32, %arg1: i32) -> (i32, i32) {
    %c0_i32 = arith.constant 0 : i32
    %c0_i32_0 = arith.constant 0 : i32
    return %arg0, %c0_i32 : i32, i32
  }
  func.func @transform_1(%arg0: i32, %arg1: i32) -> (i32, i32) {
    %c0_i32 = arith.constant 0 : i32
    %c0_i32_0 = arith.constant 0 : i32
    return %c0_i32, %arg1 : i32, i32
  }
  func.func @transform_2(%arg0: i32, %arg1: i32) -> (i32, i32) {
    %c0_i32 = arith.constant 0 : i32
    %c0_i32_0 = arith.constant 0 : i32
    return %arg0, %c0_i32 : i32, i32
  }
  func.func @transform_3(%arg0: i32, %arg1: i32) -> (i32, i32) {
    %c0_i32 = arith.constant 0 : i32
    %c0_i32_0 = arith.constant 0 : i32
    return %arg0, %c0_i32 : i32, i32
  }
}

</mosaic_0001>

<bundles_post_ra>
// kernel: tpu_custom_call.1
= control target key start
LH: loop header
LB: loop body
LE: loop exit
PB: predicated region body
PF: predicated region fallthrough
CT: control target
= control target key end

     0   :  { %s764_s12 = smov 0   ;;  %s766_s13 = smov 0   ;;  %s881_s0 = inlined_call_operand.vmem [shape: f32[128,64], index: 0, kind: input, shape index: {}]   ;;  %s882_s1 = inlined_call_operand.vmem [shape: f32[64,128], index: 1, kind: input, shape index: {}]   ;;  %s883_s2 = inlined_call_operand.vmem [shape: f32[128,1], index: 2, kind: input, shape index: {}]   ;;  %s884_s3 = inlined_call_operand.vmem [shape: f32[128,1], index: 3, kind: output, shape index: {}]  }
   0x1   :  { %s768_s14 = smov 0  }
   0x2 LB: > { %s25_s15 = sadd.s32 1, %s736_s13  ;;  %p605_p0 = scmp.ge.s32.totalorder %s740_s14, 1  ;;  %s740_s14 = sphi %s768_s14, %s13_s14   ;;  %s736_s13 = sphi %s766_s13, %s886_s13   ;;  %s732_s12 = sphi %s764_s12, %s885_s12  }
   0x3   : > { %p27_p1 = scmp.ge.s32.totalorder %s25_s15, 2  ;;  %p170_p2 = scmp.lt.s32.totalorder %s740_s14, 3 }
   0x5   : > { %s888_s15 = smov (%p27_p1, %s25_s15), 0  ;;  %p171_p3 = pnand %p605_p0, %p170_p2 }
   0x6   : > { %v246_v0 = vld [vmem:[%s882_s1] sm:$0xff] (!%p171_p3)  ;;  %v247_v1 = vld [vmem:[%s882_s1 + $0x8] sm:$0xff] (!%p171_p3)  ;;  %v248_v2 = vld [vmem:[%s882_s1 + $0x10] sm:$0xff] (!%p171_p3)  ;;  %s606_s22 = sshll.u32 (!%p171_p3), %s732_s12, 3  ;;  %v742_v5 = vmov (!%p171_p3), 0   ;;  %vm254_vm0 = vcmask (!%p171_p3), 523264  }
   0x7   : > { %174 = sbr.rel (%p171_p3) target bundleno = 412 (0x19c), region = 32  ;;  %v666_v3 = vpack.c.bf16 (!%p171_p3), %v247_v1, %v246_v0  ;;  %v249_v4 = vld [vmem:[%s882_s1 + $0x18] sm:$0xff] (!%p171_p3)  ;;  %p204_p4 = scmp.lt.s32.totalorder (!%p171_p3), %s606_s22, 15  ;;  %717 = vset.pattern.permute.xlu1 (!%p171_p3), %v742_v5  ;;  %716 = vset.pattern.permute.xlu0 (!%p171_p3), %v742_v5  ;;  %v250_v7 = vld [vmem:[%s882_s1 + $0x20] sm:$0xff] (!%p171_p3)  ;;  %v251_v8 = vld [vmem:[%s882_s1 + $0x28] sm:$0xff] (!%p171_p3)  ;;  %vm229_vm1 = vcmask (!%p171_p3), 7168  }
   0x8   : > { %v670_v6 = vpack.c.bf16 (!%p171_p3), %v249_v4, %v248_v2  ;;  %v674_v9 = vpack.c.bf16 (!%p171_p3), %v251_v8, %v250_v7  ;;  %v252_v10 = vld [vmem:[%s882_s1 + $0x30] sm:$0xff] (!%p171_p3)  ;;  %v253_v11 = vld [vmem:[%s882_s1 + $0x38] sm:$0xff] (!%p171_p3)  ;;  %v743_v29 = vmov (!%p171_p3), 0.0  }
   0x9   : > { %667 = vmatprep.subr.bf16.mxu0 (!%p171_p3), %v666_v3  ;;  %682 = vmatprep.subr.bf16.mxu1 (!%p171_p3), %v666_v3  ;;  %v678_v14 = vpack.c.bf16 (!%p171_p3), %v253_v11, %v252_v10  ;;  %235 = vst.msk [vmem:[#allocation2 + $0x28] sm:$0xff] (!%p171_p3), %vm229_vm1, %v743_v29  ;;  %230 = vst.msk [vmem:[#allocation2] sm:$0xff] (!%p171_p3), %vm229_vm1, %v743_v29 }
   0xa   : > { %669 = vmatpush3.bf16.msra.mxu0 (!%p171_p3), %v666_v3  ;;  %686 = vmatpush3.bf16.msra.mxu1 (!%p171_p3), %v666_v3  ;;  %231 = vst.msk [vmem:[#allocation2 + $0x8] sm:$0xff] (!%p171_p3), %vm229_vm1, %v743_v29  ;;  %232 = vst.msk [vmem:[#allocation2 + $0x10] sm:$0xff] (!%p171_p3), %vm229_vm1, %v743_v29 }
   0xb   : > { %671 = vmatprep.subr.bf16.mxu0 (!%p171_p3), %v670_v6  ;;  %683 = vmatprep.subr.bf16.mxu1 (!%p171_p3), %v670_v6  ;;  %233 = vst.msk [vmem:[#allocation2 + $0x18] sm:$0xff] (!%p171_p3), %vm229_vm1, %v743_v29  ;;  %234 = vst.msk [vmem:[#allocation2 + $0x20] sm:$0xff] (!%p171_p3), %vm229_vm1, %v743_v29 }
   0xc   : > { %236 = vst.msk [vmem:[#allocation2 + $0x30] sm:$0xff] (!%p171_p3), %vm229_vm1, %v743_v29  ;;  %237 = vst.msk [vmem:[#allocation2 + $0x38] sm:$0xff] (!%p171_p3), %vm229_vm1, %v743_v29 }
   0xe   : > { %s890_s22 = smov (!%p204_p4, %s606_s22), 15  ;;  %673 = vmatpush3.bf16.msra.mxu0 %v670_v6  ;;  %687 = vmatpush3.bf16.msra.mxu1 %v670_v6 }
   0xf   : > { %s800_s29 = sshll.u32 %s890_s22, 3  ;;  %675 = vmatprep.subr.bf16.mxu0 %v674_v9  ;;  %684 = vmatprep.subr.bf16.mxu1 %v674_v9 }
  0x10   : > { %s812_s9 = scalar_lea.vmem %s881_s0, %s800_s29  ;;  %s820_s12 = scalar_lea.vmem %s883_s2, %s800_s29  ;;  %v453_v62 = vld [vmem:[#allocation2 + $0x28] sm:$0xff]  ;;  %v448_v5 = vld [vmem:[#allocation2] sm:$0xff] }
  0x11   : > { %v238_v12 = vld [vmem:[%s812_s9] sm:$0xff]  ;;  %v386_v15 = vld [vmem:[%s820_s12 + $0x10] sm:$0xff]  ;;  %v387_v17 = vld [vmem:[%s820_s12 + $0x18] sm:$0xff]  ;;  %s223_s18 = scalar_lea.vmem %s884_s3, %s800_s29 }
  0x12   : > { %v242_v13 = vld [vmem:[%s812_s9 + $0x20] sm:$0xff]  ;;  %654 = vmatprep.mubr.msk.f32.mxu0 %vm254_vm0, %v238_v12  ;;  %404 = vperm.xlu1 %717, %v386_v15   ;;  %v385_v18 = vld [vmem:[%s820_s12 + $0x8] sm:$0xff]  ;;  %v240_v21 = vld [vmem:[%s812_s9 + $0x10] sm:$0xff] }
  0x13   : > { %660 = vmatprep.mubr.msk.f32.mxu1 %vm254_vm0, %v242_v13  ;;  %v384_v16 = vld [vmem:[%s820_s12] sm:$0xff]  ;;  %677 = vmatpush3.bf16.msra.mxu0 %v674_v9  ;;  %v239_v19 = vld [vmem:[%s812_s9 + $0x8] sm:$0xff]  ;;  %v244_v22 = vld [vmem:[%s812_s9 + $0x30] sm:$0xff] }
  0x14   : > { %688 = vmatpush3.bf16.msra.mxu1 %v674_v9  ;;  %679 = vmatprep.subr.bf16.mxu0 %v678_v14  ;;  %v243_v20 = vld [vmem:[%s812_s9 + $0x28] sm:$0xff]  ;;  %v388_v24 = vld [vmem:[%s820_s12 + $0x20] sm:$0xff]  ;;  %v241_v25 = vld [vmem:[%s812_s9 + $0x18] sm:$0xff] }
  0x15   : > { %685 = vmatprep.subr.bf16.mxu1 %v678_v14  ;;  %394 = vperm.xlu0 %716, %v384_v16   ;;  %v389_v23 = vld [vmem:[%s820_s12 + $0x28] sm:$0xff]  ;;  %v245_v26 = vld [vmem:[%s812_s9 + $0x38] sm:$0xff]  ;;  %v390_v28 = vld [vmem:[%s820_s12 + $0x30] sm:$0xff] }
  0x16   : > { %409 = vperm.xlu1 %717, %v387_v17   ;;  %v391_v27 = vld [vmem:[%s820_s12 + $0x38] sm:$0xff]  ;;  %v449_v63 = vld [vmem:[#allocation2 + $0x8] sm:$0xff]  ;;  %v452_v4 = vld [vmem:[#allocation2 + $0x20] sm:$0xff] }
  0x17   : > { %681 = vmatpush3.bf16.msra.mxu0 %v678_v14  ;;  %v454_v10 = vld [vmem:[#allocation2 + $0x30] sm:$0xff]  ;;  %v451_v11 = vld [vmem:[#allocation2 + $0x18] sm:$0xff] }
  0x18   : > { %689 = vmatpush3.bf16.msra.mxu1 %v678_v14 }
  0x19   : > { %399 = vperm.xlu0 %716, %v385_v18   ;;  %v450_v18 = vld [vmem:[#allocation2 + $0x10] sm:$0xff] }
  0x1a   : > { %655 = vmatmul.mubr.msk.f32.vlgmr.msra.gmra.mrb[0].mxu0 %vm254_vm0, %v239_v19  ;;  %419 = vperm.xlu1 %717, %v389_v23   ;;  %v455_v23 = vld [vmem:[#allocation2 + $0x38] sm:$0xff] }
  0x1b   : > { %661 = vmatmul.mubr.msk.f32.vlgmr.msra.gmra.mrb[0].mxu1 %vm254_vm0, %v243_v20  ;;  %657 = vmatprep.mubr.msk.f32.mxu0 %vm254_vm0, %v240_v21 }
  0x1c   : > { %663 = vmatprep.mubr.msk.f32.mxu1 %vm254_vm0, %v244_v22 }
  0x1d   : > { %414 = vperm.xlu0 %716, %v388_v24  }
  0x1e   : > { %658 = vmatmul.mubr.msk.f32.gmra.mrb[2].mxu0 %vm254_vm0, %v241_v25  ;;  %429 = vperm.xlu1 %717, %v391_v27  }
  0x1f   : > { %664 = vmatmul.mubr.msk.f32.gmra.mrb[2].mxu1 %vm254_vm0, %v245_v26 }
  0x21   : > { %424 = vperm.xlu0 %716, %v390_v28  }
  0x91   : > { %v405_v31 = vpop.permute.xlu1 %404 }
  0x94   : > { %v395_v30 = vpop.permute.xlu0 %394 }
  0x95   : > { %v410_v33 = vpop.permute.xlu1 %409 }
  0x98   : > { %v400_v32 = vpop.permute.xlu0 %399 }
  0x99   : > { %v420_v35 = vpop.permute.xlu1 %419 }
  0x9c   : > { %v415_v34 = vpop.permute.xlu0 %414 }
  0x9d   : > { %v430_v58 = vpop.permute.xlu1 %429 }
  0xa0   : > { %v425_v46 = vpop.permute.xlu0 %424 }
  0xed   : > { %v656_v36 = vpop.f32.mrb[0].mxu0 }
  0xee   : > { %v662_v37 = vpop.f32.mrb[0].mxu1  ;;  %v433_v38 = vsub.f32 %v656_v36, %v400_v32  ;;  %v345_v41 = vpop.f32.mrb[1].mxu0 }
  0xef   : > { %v437_v39 = vsub.f32 %v662_v37, %v420_v35  ;;  %v365_v40 = vpop.f32.mrb[1].mxu1  ;;  %v432_v42 = vsub.f32 %v345_v41, %v395_v30 }
  0xf0   : > { %v441_v43 = vmax.f32 %v433_v38, 0.0  ;;  %v436_v45 = vsub.f32 %v365_v40, %v415_v34 }
  0xf1   : > { %v445_v44 = vmax.f32 %v437_v39, 0.0  ;;  %v659_v47 = vpop.f32.mrb[2].mxu0  ;;  %v440_v49 = vmax.f32 %v432_v42, 0.0 }
  0xf2   : > { %v665_v48 = vpop.f32.mrb[2].mxu1  ;;  %458 = vadd.xlane.f32.xlu1 %v441_v43  ;;  %v355_v51 = vpop.f32.mrb[3].mxu0  ;;  %v444_v52 = vmax.f32 %v436_v45, 0.0  ;;  %v435_v53 = vsub.f32 %v659_v47, %v410_v33 }
  0xf3   : > { %466 = vadd.xlane.f32.xlu0 %v445_v44  ;;  %v375_v50 = vpop.f32.mrb[3].mxu1  ;;  %v434_v57 = vsub.f32 %v355_v51, %v405_v31  ;;  %v439_v59 = vsub.f32 %v665_v48, %v430_v58 }
  0xf4   : > { %v438_v54 = vsub.f32 %v375_v50, %v425_v46  ;;  %v443_v55 = vmax.f32 %v435_v53, 0.0 }
  0xf5   : > { %v442_v60 = vmax.f32 %v434_v57, 0.0  ;;  %v447_v61 = vmax.f32 %v439_v59, 0.0 }
  0xf6   : > { %464 = vadd.xlane.f32.xlu1 %v444_v52  ;;  %v446_v56 = vmax.f32 %v438_v54, 0.0 }
  0xf7   : > { %456 = vadd.xlane.f32.xlu0 %v440_v49 }
  0xfa   : > { %468 = vadd.xlane.f32.xlu1 %v446_v56 }
  0xfb   : > { %462 = vadd.xlane.f32.xlu0 %v443_v55 }
  0xff   : > { %460 = vadd.xlane.f32.xlu0 %v442_v60 }
 0x103   : > { %470 = vadd.xlane.f32.xlu0 %v447_v61 }
 0x17f   : > { %v459_v1 = vpop.xlane.xlu1 %458 }
 0x180   : > { %v467_v0 = vpop.xlane.xlu0 %466  ;;  %v473_v3 = vadd.f32 %v459_v1, %v449_v63 }
 0x181   : > { %v477_v2 = vadd.f32 %v467_v0, %v453_v62 }
 0x182   : > { %482 = vst.msk [vmem:[#allocation2 + $0x8] sm:$0xff] %vm229_vm1, %v473_v3 }
 0x183   : > { %486 = vst.msk [vmem:[#allocation2 + $0x28] sm:$0xff] %vm229_vm1, %v477_v2  ;;  %v465_v6 = vpop.xlane.xlu1 %464 }
 0x184   : > { %v457_v7 = vpop.xlane.xlu0 %456  ;;  %v476_v8 = vadd.f32 %v465_v6, %v452_v4 }
 0x185   : > { %v472_v9 = vadd.f32 %v457_v7, %v448_v5 }
 0x186   : > { %485 = vst.msk [vmem:[#allocation2 + $0x20] sm:$0xff] %vm229_vm1, %v476_v8 }
 0x187   : > { %481 = vst.msk [vmem:[#allocation2] sm:$0xff] %vm229_vm1, %v472_v9  ;;  %v469_v12 = vpop.xlane.xlu1 %468 }
 0x188   : > { %v463_v13 = vpop.xlane.xlu0 %462  ;;  %v478_v14 = vadd.f32 %v469_v12, %v454_v10 }
 0x189   : > { %v475_v15 = vadd.f32 %v463_v13, %v451_v11  ;;  %v493_v17 = vld [vmem:[#allocation2 + $0x8] sm:$0xff] }
 0x18a   : > { %v497_v16 = vld [vmem:[#allocation2 + $0x28] sm:$0xff]  ;;  %501 = vst.msk [vmem:[%s223_s18 + $0x8] sm:$0xff] %vm229_vm1, %v493_v17  ;;  %487 = vst.msk [vmem:[#allocation2 + $0x30] sm:$0xff] %vm229_vm1, %v478_v14 }
 0x18b   : > { %505 = vst.msk [vmem:[%s223_s18 + $0x28] sm:$0xff] %vm229_vm1, %v497_v16  ;;  %484 = vst.msk [vmem:[#allocation2 + $0x18] sm:$0xff] %vm229_vm1, %v475_v15 }
 0x18c   : > { %v461_v19 = vpop.xlane.xlu0 %460 }
 0x18d   : > { %v474_v20 = vadd.f32 %v461_v19, %v450_v18  ;;  %v496_v21 = vld [vmem:[#allocation2 + $0x20] sm:$0xff] }
 0x18e   : > { %v492_v22 = vld [vmem:[#allocation2] sm:$0xff]  ;;  %504 = vst.msk [vmem:[%s223_s18 + $0x20] sm:$0xff] %vm229_vm1, %v496_v21 }
 0x18f   : > { %500 = vst.msk [vmem:[%s223_s18] sm:$0xff] %vm229_vm1, %v492_v22  ;;  %483 = vst.msk [vmem:[#allocation2 + $0x10] sm:$0xff] %vm229_vm1, %v474_v20 }
 0x190   : > { %v471_v24 = vpop.xlane.xlu0 %470 }
 0x191   : > { %v479_v25 = vadd.f32 %v471_v24, %v455_v23  ;;  %v498_v26 = vld [vmem:[#allocation2 + $0x30] sm:$0xff] }
 0x192   : > { %v495_v27 = vld [vmem:[#allocation2 + $0x18] sm:$0xff]  ;;  %506 = vst.msk [vmem:[%s223_s18 + $0x30] sm:$0xff] %vm229_vm1, %v498_v26 }
 0x193   : > { %503 = vst.msk [vmem:[%s223_s18 + $0x18] sm:$0xff] %vm229_vm1, %v495_v27  ;;  %488 = vst.msk [vmem:[#allocation2 + $0x38] sm:$0xff] %vm229_vm1, %v479_v25 }
 0x196   : > { %v494_v28 = vld [vmem:[#allocation2 + $0x10] sm:$0xff] }
 0x197   : > { %502 = vst.msk [vmem:[%s223_s18 + $0x10] sm:$0xff] %vm229_vm1, %v494_v28 }
 0x19a   : > { %v499_v29 = vld [vmem:[#allocation2 + $0x38] sm:$0xff] }
 0x19b   : > { %507 = vst.msk [vmem:[%s223_s18 + $0x38] sm:$0xff] %vm229_vm1, %v499_v29 }
 0x19c PF: > { %s13_s14 = sadd.s32 1, %s740_s14   ;;  %s885_s12 = smov %s736_s13 }
 0x19d   : > { %p10_p5 = scmp.ge.s32.totalorder %s13_s14, 4   ;;  %s886_s13 = smov %s888_s15 }
 0x19f   :  { %12 = sbr.rel (!%p10_p5) target bundleno = 2 (0x2), region = 76 }

</bundles_post_ra>
